<compile_context>
chip_gen: v7x
topology: tpu7x:2x2x1
jax: 0.10.0
libtpu: 0.0.40
codegen_flags: <defaults>
</compile_context>

<pallas_src>
import functools

import numpy as np
import jax
import jax.numpy as jnp
from jax.experimental import pallas as pl
from jax.experimental.pallas import tpu as pltpu


def _round_up(x, m):
    return ((x + m - 1) // m) * m


def _ctx_encoder_kernel(x_ref, wbig_ref, mxx_ref, mxy_ref, ebig_ref, out_ref,
                        *, num_ent, blk_r, blk_p):
    n = num_ent
    x = x_ref[...]                                                      # (Bt, N*D+1)

    # One fused matmul: blocks 0..N-1 = per-j relation linear terms (lanes i*R+r),
    # block N = diagonal (i==j) pre-activation, block N+1 = property encoder.
    lin = jnp.dot(x, wbig_ref[...], preferred_element_type=jnp.float32)  # (Bt, (N+2)*128)

    # Pairwise coordinate differences via constant matrices (MXU), then distance.
    dx = jnp.dot(x, mxx_ref[...], preferred_element_type=jnp.float32)    # (Bt, N*N)
    dy = jnp.dot(x, mxy_ref[...], preferred_element_type=jnp.float32)    # (Bt, N*N)
    dist = jnp.sqrt(dx * dx + dy * dy)                                   # (Bt, N*N)
    # Expand dist onto the (j, i*R+r) lane layout scaled by w_dist (MXU).
    dterm = jnp.dot(dist, ebig_ref[...], preferred_element_type=jnp.float32)  # (Bt, N*blk_r)

    # Sum_j relu(rel_pre) over ALL j using 128-aligned lane slices (static unroll).
    bt = x.shape[0]
    acc = jnp.zeros((bt, blk_r), jnp.float32)
    for j in range(n):
        s = j * blk_r
        acc = acc + jnp.maximum(lin[:, s:s + blk_r] + dterm[:, s:s + blk_r], 0.0)

    # Remove the i == j contribution (dist = 0 there), then mean over N-1 neighbours.
    diag = jnp.maximum(lin[:, n * blk_r:(n + 1) * blk_r], 0.0)
    rel_pooled = (acc - diag) * (1.0 / (n - 1))

    # Property encoder: Linear + ReLU (bias folded into the matmul via the 1-column).
    p0 = (n + 1) * blk_r
    prop = jnp.maximum(lin[:, p0:p0 + blk_p], 0.0)

    # Single lane-dense, 128-aligned store: [prop(128) | rel(128)].
    out_ref[...] = jnp.concatenate([prop, rel_pooled], axis=-1)


def relational_attention_context_encoder2(ctx, params, *, num_ent, dim_ent,
                                          block_batch=512):
    """Forward pass. ctx: (B, num_ent*dim_ent) float32. Returns (B, num_ent, nembed_ctx)."""
    N, D = num_ent, dim_ent
    Dp = D - 2
    W_rel = jnp.asarray(params["W_rel"], jnp.float32)                 # (2*Dp + D + 1, R)
    b_rel = jnp.asarray(params["b_rel"], jnp.float32).reshape(-1)     # (R,)
    W_prop = jnp.asarray(params["W_prop"], jnp.float32)               # (Dp, P)
    b_prop = jnp.asarray(params["b_prop"], jnp.float32).reshape(-1)   # (P,)
    R = W_rel.shape[1]
    P = W_prop.shape[1]
    assert N >= 2
    assert W_rel.shape[0] == 2 * Dp + D + 1 and W_prop.shape[0] == Dp

    BLK_R = _round_up(N * R, 128)     # per-j relation block width (lane padded)
    BLK_P = _round_up(N * P, 128)     # property block width (lane padded)
    ND1 = N * D + 1                   # entity features + constant-1 bias column

    # --- split the relation Linear into per-entity "i" / "j" weights (wrapper side) ---
    W_pi = W_rel[0:Dp]                # acts on props_i
    W_pj = W_rel[Dp:2 * Dp]           # acts on props_j
    W_df = W_rel[2 * Dp:2 * Dp + D]   # acts on ents_i - ents_j
    w_dist = W_rel[2 * Dp + D]        # (R,) distance weight
    zR = jnp.zeros((2, R), jnp.float32)
    W_a = W_df + jnp.concatenate([zR, W_pi], axis=0)                  # per-entity-i (D, R)
    W_c = -W_df + jnp.concatenate([zR, W_pj], axis=0)                 # per-entity-j (D, R)
    Wp_full = jnp.concatenate([jnp.zeros((2, P), jnp.float32), W_prop], axis=0)  # (D, P)

    eyeN = np.eye(N, dtype=np.float32)

    # Relation blocks, one per j: rows (i_row, d) [+ bias row], cols (i, r).
    T = (eyeN[None, :, None, :, None] * W_a[None, None, :, None, :]
         + eyeN[:, :, None, None, None] * W_c[None, None, :, None, :])  # (Nj, Nrow, D, Ni, R)
    T = T.reshape(N, N * D, N * R)
    bias_rel = jnp.tile(b_rel.reshape(1, R), (1, N))                    # (1, N*R)
    T = jnp.concatenate([T, jnp.broadcast_to(bias_rel[None], (N, 1, N * R))], axis=1)
    T = jnp.pad(T, ((0, 0), (0, 0), (0, BLK_R - N * R)))                # (Nj, ND1, BLK_R)
    rel_cols = jnp.transpose(T, (1, 0, 2)).reshape(ND1, N * BLK_R)

    # Diagonal (i == j) pre-activation block (dist term is exactly 0 there).
    Dg = (eyeN[:, None, :, None] * (W_a + W_c)[None, :, None, :]).reshape(N * D, N * R)
    Dg = jnp.concatenate([Dg, bias_rel], axis=0)
    Dg = jnp.pad(Dg, ((0, 0), (0, BLK_R - N * R)))                      # (ND1, BLK_R)

    # Property encoder block.
    Pb = (eyeN[:, None, :, None] * Wp_full[None, :, None, :]).reshape(N * D, N * P)
    Pb = jnp.concatenate([Pb, jnp.tile(b_prop.reshape(1, P), (1, N))], axis=0)
    Pb = jnp.pad(Pb, ((0, 0), (0, BLK_P - N * P)))                      # (ND1, BLK_P)

    W_big = jnp.concatenate([rel_cols, Dg, Pb], axis=1)                 # (ND1, (N+1)*BLK_R + BLK_P)

    # Constant matrices: pairwise coordinate differences and dist -> lane expansion.
    MX = np.zeros((N, N * N), np.float32)                               # column (j, i): x_i - x_j
    for j in range(N):
        for i in range(N):
            MX[i, j * N + i] += 1.0
            MX[j, j * N + i] -= 1.0
    Sel_x = np.zeros((ND1, N), np.float32)
    Sel_y = np.zeros((ND1, N), np.float32)
    for i in range(N):
        Sel_x[i * D + 0, i] = 1.0
        Sel_y[i * D + 1, i] = 1.0
    MXx = jnp.asarray(Sel_x @ MX)                                       # (ND1, N*N)
    MXy = jnp.asarray(Sel_y @ MX)                                       # (ND1, N*N)

    S = (eyeN[:, None, :, None] * eyeN[None, :, None, :]).reshape(N * N, N, N)
    E = jnp.asarray(S)[..., None] * w_dist[None, None, None, :]         # (N*N, Nj, Ni, R)
    E = E.reshape(N * N, N, N * R)
    E = jnp.pad(E, ((0, 0), (0, 0), (0, BLK_R - N * R)))
    E_big = E.reshape(N * N, N * BLK_R)                                 # (N*N, N*BLK_R)

    # --- batch tiling: Bt rows per grid step (padded), lane-dense input/output ---
    B = ctx.shape[0]
    x = jnp.concatenate([ctx.reshape(B, N * D).astype(jnp.float32),
                         jnp.ones((B, 1), jnp.float32)], axis=1)        # (B, ND1)
    Bt = min(_round_up(block_batch, 8), _round_up(B, 8))
    Bpad = _round_up(B, Bt)
    if Bpad != B:
        x = jnp.pad(x, ((0, Bpad - B), (0, 0)))

    out_w = BLK_P + BLK_R
    kernel = functools.partial(_ctx_encoder_kernel, num_ent=N, blk_r=BLK_R, blk_p=BLK_P)
    out = pl.pallas_call(
        kernel,
        out_shape=jax.ShapeDtypeStruct((Bpad, out_w), jnp.float32),
        grid=(Bpad // Bt,),
        in_specs=[
            pl.BlockSpec((Bt, ND1), lambda b: (b, 0)),          # batch block of entities
            pl.BlockSpec(W_big.shape, lambda b: (0, 0)),        # fused linear weights
            pl.BlockSpec(MXx.shape, lambda b: (0, 0)),          # x-difference matrix
            pl.BlockSpec(MXy.shape, lambda b: (0, 0)),          # y-difference matrix
            pl.BlockSpec(E_big.shape, lambda b: (0, 0)),        # dist -> lane expansion
        ],
        out_specs=pl.BlockSpec((Bt, out_w), lambda b: (b, 0)),
        compiler_params=pltpu.CompilerParams(
            dimension_semantics=("parallel",),
            vmem_limit_bytes=32 * 1024 * 1024),
    )(x, W_big, MXx, MXy, E_big)

    out = out[:B]
    prop = out[:, :N * P].reshape(B, N, P)
    rel = out[:, BLK_P:BLK_P + N * R].reshape(B, N, R)
    return jnp.concatenate([prop, rel], axis=-1)


def _reference_forward(ctx, params, *, num_ent, dim_ent):
    """Plain-JAX transcription of the PyTorch forward (eval mode) for validation."""
    W_rel = jnp.asarray(params["W_rel"], jnp.float32)
    b_rel = jnp.asarray(params["b_rel"], jnp.float32).reshape(-1)
    W_prop = jnp.asarray(params["W_prop"], jnp.float32)
    b_prop = jnp.asarray(params["b_prop"], jnp.float32).reshape(-1)
    B = ctx.shape[0]
    ents = ctx.reshape(B, num_ent, dim_ent)
    rows = []
    for i in range(num_ent):
        cols = []
        for j in range(num_ent):
            if i == j:
                continue
            dist = jnp.sqrt((ents[:, i, 0] - ents[:, j, 0]) ** 2 +
                            (ents[:, i, 1] - ents[:, j, 1]) ** 2)
            f = jnp.concatenate(
                [ents[:, i, 2:], ents[:, j, 2:], ents[:, i, :] - ents[:, j, :],
                 dist[:, None]], axis=1)
            cols.append(f[:, None, :])
        rows.append(jnp.concatenate(cols, axis=1)[:, None, :, :])
    pairs = jnp.concatenate(rows, axis=1)                       # (B, N, N-1, rel_in)
    rel = jax.nn.relu(pairs @ W_rel + b_rel)                    # (B, N, N-1, R)
    rel_pooled = rel.mean(axis=2)                               # (B, N, R)
    prop = jax.nn.relu(ents[:, :, 2:] @ W_prop + b_prop)        # (B, N, P)
    return jnp.concatenate([prop, rel_pooled], axis=2)


if __name__ == "__main__":
    # Small shapes consistent with the module: num_ent=7, dim_ent=4, nembed_ctx=32.
    # B=50 with block_batch=32 exercises multi-step grid + batch padding.
    B, N, D, E = 50, 7, 4, 32
    R = P = E // 2
    rel_in = 2 * (D - 2) + D + 1          # = 9 (props_i, props_j, diff, dist)

    key = jax.random.PRNGKey(0)
    k_ctx, k_wr, k_br, k_wp, k_bp = jax.random.split(key, 5)
    ctx = jax.random.normal(k_ctx, (B, N * D), dtype=jnp.float32)

    # Deterministic Linear-style init (uniform in +/- 1/sqrt(fan_in)); weights stored
    # as (in, out) so the math is x @ W + b (same semantics as nn.Linear).
    br = 1.0 / float(np.sqrt(rel_in))
    bp = 1.0 / float(np.sqrt(D - 2))
    params = {
        "W_rel": jax.random.uniform(k_wr, (rel_in, R), jnp.float32, -br, br),
        "b_rel": jax.random.uniform(k_br, (R,), jnp.float32, -br, br),
        "W_prop": jax.random.uniform(k_wp, (D - 2, P), jnp.float32, -bp, bp),
        "b_prop": jax.random.uniform(k_bp, (P,), jnp.float32, -bp, bp),
    }

    fwd = jax.jit(functools.partial(relational_attention_context_encoder2,
                                    num_ent=N, dim_ent=D, block_batch=32))
    out = jax.block_until_ready(fwd(ctx, params))

    ref = _reference_forward(ctx, params, num_ent=N, dim_ent=D)
    np.testing.assert_allclose(np.asarray(out), np.asarray(ref), rtol=2e-3, atol=2e-3)

    print("KERNEL_OK")
</pallas_src>

<mosaic_0001>
module attributes {stable_mosaic.version = 11 : i64} {
  func.func @_ctx_encoder_kernel(%arg0: i32, %arg1: memref<32x29xf32, #tpu.memory_space<vmem>>, %arg2: memref<29x1152xf32, #tpu.memory_space<vmem>>, %arg3: memref<29x49xf32, #tpu.memory_space<vmem>>, %arg4: memref<29x49xf32, #tpu.memory_space<vmem>>, %arg5: memref<49x896xf32, #tpu.memory_space<vmem>>, %arg6: memref<32x256xf32, #tpu.memory_space<vmem>>) attributes {dimension_semantics = [#tpu.dimension_semantics<parallel>], iteration_bounds = array<i64: 2>, scalar_prefetch = 0 : i64, scratch_operands = 0 : i64, tpu.core_type = #tpu.core_type<tc>, window_params = [{transform_indices = @transform_0, window_bounds = array<i64: 32, 29>}, {pipeline_mode = #tpu.pipeline_mode<synchronous>, transform_indices = @transform_1, window_bounds = array<i64: 29, 1152>}, {pipeline_mode = #tpu.pipeline_mode<synchronous>, transform_indices = @transform_2, window_bounds = array<i64: 29, 49>}, {pipeline_mode = #tpu.pipeline_mode<synchronous>, transform_indices = @transform_3, window_bounds = array<i64: 29, 49>}, {pipeline_mode = #tpu.pipeline_mode<synchronous>, transform_indices = @transform_4, window_bounds = array<i64: 49, 896>}, {transform_indices = @transform_5, window_bounds = array<i64: 32, 256>}]} {
    %c0 = arith.constant 0 : index
    %c0_0 = arith.constant 0 : index
    %0 = vector.load %arg1[%c0, %c0_0] : memref<32x29xf32, #tpu.memory_space<vmem>>, vector<32x29xf32>
    %c0_1 = arith.constant 0 : index
    %c0_2 = arith.constant 0 : index
    %1 = vector.load %arg2[%c0_1, %c0_2] : memref<29x1152xf32, #tpu.memory_space<vmem>>, vector<29x1152xf32>
    %cst = arith.constant dense<0.000000e+00> : vector<32x1152xf32>
    %2 = tpu.matmul %0, %1, %cst {dimension_numbers = #tpu.dot_dimension_numbers<[1], [0], [0], [1], [0, 0, 1, 1], [], []>} : vector<32x29xf32>, vector<29x1152xf32>, vector<32x1152xf32> -> vector<32x1152xf32>
    %c0_3 = arith.constant 0 : index
    %c0_4 = arith.constant 0 : index
    %3 = vector.load %arg3[%c0_3, %c0_4] : memref<29x49xf32, #tpu.memory_space<vmem>>, vector<29x49xf32>
    %cst_5 = arith.constant dense<0.000000e+00> : vector<32x49xf32>
    %4 = tpu.matmul %0, %3, %cst_5 {dimension_numbers = #tpu.dot_dimension_numbers<[1], [0], [0], [1], [0, 0, 1, 1], [], []>} : vector<32x29xf32>, vector<29x49xf32>, vector<32x49xf32> -> vector<32x49xf32>
    %c0_6 = arith.constant 0 : index
    %c0_7 = arith.constant 0 : index
    %5 = vector.load %arg4[%c0_6, %c0_7] : memref<29x49xf32, #tpu.memory_space<vmem>>, vector<29x49xf32>
    %cst_8 = arith.constant dense<0.000000e+00> : vector<32x49xf32>
    %6 = tpu.matmul %0, %5, %cst_8 {dimension_numbers = #tpu.dot_dimension_numbers<[1], [0], [0], [1], [0, 0, 1, 1], [], []>} : vector<32x29xf32>, vector<29x49xf32>, vector<32x49xf32> -> vector<32x49xf32>
    %7 = arith.mulf %4, %4 : vector<32x49xf32>
    %8 = arith.mulf %6, %6 : vector<32x49xf32>
    %9 = arith.addf %7, %8 : vector<32x49xf32>
    %10 = math.sqrt %9 : vector<32x49xf32>
    %c0_9 = arith.constant 0 : index
    %c0_10 = arith.constant 0 : index
    %11 = vector.load %arg5[%c0_9, %c0_10] : memref<49x896xf32, #tpu.memory_space<vmem>>, vector<49x896xf32>
    %cst_11 = arith.constant dense<0.000000e+00> : vector<32x896xf32>
    %12 = tpu.matmul %10, %11, %cst_11 {dimension_numbers = #tpu.dot_dimension_numbers<[1], [0], [0], [1], [0, 0, 1, 1], [], []>} : vector<32x49xf32>, vector<49x896xf32>, vector<32x896xf32> -> vector<32x896xf32>
    %cst_12 = arith.constant 0.000000e+00 : f32
    %13 = vector.broadcast %cst_12 : f32 to vector<32x128xf32>
    %14 = vector.extract_strided_slice %2 {offsets = [0, 0], sizes = [32, 128], strides = [1, 1]} : vector<32x1152xf32> to vector<32x128xf32>
    %15 = vector.extract_strided_slice %12 {offsets = [0, 0], sizes = [32, 128], strides = [1, 1]} : vector<32x896xf32> to vector<32x128xf32>
    %16 = arith.addf %14, %15 : vector<32x128xf32>
    %cst_13 = arith.constant 0.000000e+00 : f32
    %17 = vector.broadcast %cst_13 : f32 to vector<32x128xf32>
    %18 = arith.maximumf %16, %17 : vector<32x128xf32>
    %19 = arith.addf %13, %18 : vector<32x128xf32>
    %20 = vector.extract_strided_slice %2 {offsets = [0, 128], sizes = [32, 128], strides = [1, 1]} : vector<32x1152xf32> to vector<32x128xf32>
    %21 = vector.extract_strided_slice %12 {offsets = [0, 128], sizes = [32, 128], strides = [1, 1]} : vector<32x896xf32> to vector<32x128xf32>
    %22 = arith.addf %20, %21 : vector<32x128xf32>
    %cst_14 = arith.constant 0.000000e+00 : f32
    %23 = vector.broadcast %cst_14 : f32 to vector<32x128xf32>
    %24 = arith.maximumf %22, %23 : vector<32x128xf32>
    %25 = arith.addf %19, %24 : vector<32x128xf32>
    %26 = vector.extract_strided_slice %2 {offsets = [0, 256], sizes = [32, 128], strides = [1, 1]} : vector<32x1152xf32> to vector<32x128xf32>
    %27 = vector.extract_strided_slice %12 {offsets = [0, 256], sizes = [32, 128], strides = [1, 1]} : vector<32x896xf32> to vector<32x128xf32>
    %28 = arith.addf %26, %27 : vector<32x128xf32>
    %cst_15 = arith.constant 0.000000e+00 : f32
    %29 = vector.broadcast %cst_15 : f32 to vector<32x128xf32>
    %30 = arith.maximumf %28, %29 : vector<32x128xf32>
    %31 = arith.addf %25, %30 : vector<32x128xf32>
    %32 = vector.extract_strided_slice %2 {offsets = [0, 384], sizes = [32, 128], strides = [1, 1]} : vector<32x1152xf32> to vector<32x128xf32>
    %33 = vector.extract_strided_slice %12 {offsets = [0, 384], sizes = [32, 128], strides = [1, 1]} : vector<32x896xf32> to vector<32x128xf32>
    %34 = arith.addf %32, %33 : vector<32x128xf32>
    %cst_16 = arith.constant 0.000000e+00 : f32
    %35 = vector.broadcast %cst_16 : f32 to vector<32x128xf32>
    %36 = arith.maximumf %34, %35 : vector<32x128xf32>
    %37 = arith.addf %31, %36 : vector<32x128xf32>
    %38 = vector.extract_strided_slice %2 {offsets = [0, 512], sizes = [32, 128], strides = [1, 1]} : vector<32x1152xf32> to vector<32x128xf32>
    %39 = vector.extract_strided_slice %12 {offsets = [0, 512], sizes = [32, 128], strides = [1, 1]} : vector<32x896xf32> to vector<32x128xf32>
    %40 = arith.addf %38, %39 : vector<32x128xf32>
    %cst_17 = arith.constant 0.000000e+00 : f32
    %41 = vector.broadcast %cst_17 : f32 to vector<32x128xf32>
    %42 = arith.maximumf %40, %41 : vector<32x128xf32>
    %43 = arith.addf %37, %42 : vector<32x128xf32>
    %44 = vector.extract_strided_slice %2 {offsets = [0, 640], sizes = [32, 128], strides = [1, 1]} : vector<32x1152xf32> to vector<32x128xf32>
    %45 = vector.extract_strided_slice %12 {offsets = [0, 640], sizes = [32, 128], strides = [1, 1]} : vector<32x896xf32> to vector<32x128xf32>
    %46 = arith.addf %44, %45 : vector<32x128xf32>
    %cst_18 = arith.constant 0.000000e+00 : f32
    %47 = vector.broadcast %cst_18 : f32 to vector<32x128xf32>
    %48 = arith.maximumf %46, %47 : vector<32x128xf32>
    %49 = arith.addf %43, %48 : vector<32x128xf32>
    %50 = vector.extract_strided_slice %2 {offsets = [0, 768], sizes = [32, 128], strides = [1, 1]} : vector<32x1152xf32> to vector<32x128xf32>
    %51 = vector.extract_strided_slice %12 {offsets = [0, 768], sizes = [32, 128], strides = [1, 1]} : vector<32x896xf32> to vector<32x128xf32>
    %52 = arith.addf %50, %51 : vector<32x128xf32>
    %cst_19 = arith.constant 0.000000e+00 : f32
    %53 = vector.broadcast %cst_19 : f32 to vector<32x128xf32>
    %54 = arith.maximumf %52, %53 : vector<32x128xf32>
    %55 = arith.addf %49, %54 : vector<32x128xf32>
    %56 = vector.extract_strided_slice %2 {offsets = [0, 896], sizes = [32, 128], strides = [1, 1]} : vector<32x1152xf32> to vector<32x128xf32>
    %cst_20 = arith.constant 0.000000e+00 : f32
    %57 = vector.broadcast %cst_20 : f32 to vector<32x128xf32>
    %58 = arith.maximumf %56, %57 : vector<32x128xf32>
    %59 = arith.subf %55, %58 : vector<32x128xf32>
    %cst_21 = arith.constant 0.166666672 : f32
    %60 = vector.broadcast %cst_21 : f32 to vector<32x128xf32>
    %61 = arith.mulf %59, %60 : vector<32x128xf32>
    %62 = vector.extract_strided_slice %2 {offsets = [0, 1024], sizes = [32, 128], strides = [1, 1]} : vector<32x1152xf32> to vector<32x128xf32>
    %cst_22 = arith.constant 0.000000e+00 : f32
    %63 = vector.broadcast %cst_22 : f32 to vector<32x128xf32>
    %64 = arith.maximumf %62, %63 : vector<32x128xf32>
    %65 = tpu.concatenate %64, %61 in 1 : vector<32x128xf32>, vector<32x128xf32> -> vector<32x256xf32>
    %c0_23 = arith.constant 0 : index
    %c0_24 = arith.constant 0 : index
    %66 = vector.load %arg6[%c0_23, %c0_24] : memref<32x256xf32, #tpu.memory_space<vmem>>, vector<32x256xf32>
    tpu.vector_store %arg6[%c0_23, %c0_24], %65 {strides = array<i32>} : memref<32x256xf32, #tpu.memory_space<vmem>>, vector<32x256xf32>,
    return
  }
  func.func @transform_0(%arg0: i32) -> (i32, i32) {
    %c0_i32 = arith.constant 0 : i32
    %c0_i32_0 = arith.constant 0 : i32
    return %arg0, %c0_i32 : i32, i32
  }
  func.func @transform_1(%arg0: i32) -> (i32, i32) {
    %c0_i32 = arith.constant 0 : i32
    %c0_i32_0 = arith.constant 0 : i32
    %c0_i32_1 = arith.constant 0 : i32
    return %c0_i32, %c0_i32_0 : i32, i32
  }
  func.func @transform_2(%arg0: i32) -> (i32, i32) {
    %c0_i32 = arith.constant 0 : i32
    %c0_i32_0 = arith.constant 0 : i32
    %c0_i32_1 = arith.constant 0 : i32
    return %c0_i32, %c0_i32_0 : i32, i32
  }
  func.func @transform_3(%arg0: i32) -> (i32, i32) {
    %c0_i32 = arith.constant 0 : i32
    %c0_i32_0 = arith.constant 0 : i32
    %c0_i32_1 = arith.constant 0 : i32
    return %c0_i32, %c0_i32_0 : i32, i32
  }
  func.func @transform_4(%arg0: i32) -> (i32, i32) {
    %c0_i32 = arith.constant 0 : i32
    %c0_i32_0 = arith.constant 0 : i32
    %c0_i32_1 = arith.constant 0 : i32
    return %c0_i32, %c0_i32_0 : i32, i32
  }
  func.func @transform_5(%arg0: i32) -> (i32, i32) {
    %c0_i32 = arith.constant 0 : i32
    %c0_i32_0 = arith.constant 0 : i32
    return %arg0, %c0_i32 : i32, i32
  }
}

</mosaic_0001>

<bundles_post_ra>
// kernel: relational_attention_context_encoder2.1
= control target key start
LH: loop header
LB: loop body
LE: loop exit
PB: predicated region body
PF: predicated region fallthrough
CT: control target
= control target key end

     0   :  { %s1954_s18 = smov 0   ;;  %s2478_s0 = inlined_call_operand.vmem [shape: f32[64,29], index: 0, kind: input, shape index: {}]   ;;  %s2479_s1 = inlined_call_operand.vmem [shape: f32[29,1152], index: 1, kind: input, shape index: {}]   ;;  %s2480_s2 = inlined_call_operand.vmem [shape: f32[29,49], index: 2, kind: input, shape index: {}]   ;;  %s2481_s3 = inlined_call_operand.vmem [shape: f32[29,49], index: 3, kind: input, shape index: {}]   ;;  %s2482_s4 = inlined_call_operand.vmem [shape: f32[49,896], index: 4, kind: input, shape index: {}]   ;;  %s2483_s5 = inlined_call_operand.vmem [shape: f32[64,256], index: 5, kind: output, shape index: {}]  }
   0x1 LB: > { %s1578_s19 = sadd.s32 4294967295, %s1920_s18   ;;  %p1582_p0 = scmp.ge.s32.totalorder %s1920_s18, 1  ;;  %s1920_s18 = sphi %s1954_s18, %s15_s18  }
   0x2   : > { %p188_p1 = scmp.lt.s32.totalorder %s1920_s18, 3 }
   0x4   : > { %p189_p2 = pnand %p1582_p0, %p188_p1 }
   0x5   : > { %v235_v0 = vld [vmem:[%s2479_s1 + $0x8] sm:$0xff] (!%p189_p2)  ;;  %v244_v1 = vld [vmem:[%s2479_s1 + $0x50] sm:$0xff] (!%p189_p2)  ;;  %v234_v2 = vld [vmem:[%s2479_s1] sm:$0xff] (!%p189_p2)  ;;  %vm283_vm0 = vcmask (!%p189_p2), 1044480   ;;  %v1922_v7 = vmov (!%p189_p2), 0.0   ;;  %s1583_s7 = sshll.u32 (!%p189_p2), %s1578_s19, 2 }
   0x6   : > { %192 = sbr.rel (%p189_p2) target bundleno = 542 (0x21e), region = 40  ;;  %v1750_v3 = vpack.c.bf16 (!%p189_p2), %v244_v1, %v235_v0  ;;  %v243_v4 = vld [vmem:[%s2479_s1 + $0x48] sm:$0xff] (!%p189_p2)  ;;  %v253_v5 = vld [vmem:[%s2479_s1 + $0x98] sm:$0xff] (!%p189_p2)  ;;  %v262_v6 = vld [vmem:[%s2479_s1 + $0xe0] sm:$0x1f] (!%p189_p2)  ;;  %387 = vmatprep.mubr.f32.mxu1 (!%p189_p2), %v1922_v7  ;;  %375 = vmatprep.mubr.f32.mxu0 (!%p189_p2), %v1922_v7  ;;  %vm1923_vm1 = vmmov (!%p189_p2), 1  }
   0x7   : > { %v1752_v8 = vpack.c.bf16 (!%p189_p2), %v243_v4, %v234_v2  ;;  %v1754_v9 = vpack.c.bf16 (!%p189_p2), %v262_v6, %v253_v5  ;;  %vm1982_vm2 = vmpackc.low (!%p189_p2), %vm283_vm0, %vm1923_vm1  ;;  %v252_v11 = vld [vmem:[%s2479_s1 + $0x90] sm:$0xff] (!%p189_p2)  ;;  %v261_v12 = vld [vmem:[%s2479_s1 + $0xd8] sm:$0x1f] (!%p189_p2)  ;;  %p218_p3 = scmp.lt.s32.totalorder (!%p189_p2), %s1583_s7, 7  ;;  %vm270_vm3 = vcmask (!%p189_p2), 236544   ;;  %vm1038_vm4 = vcmask (!%p189_p2), 1040384  }
   0x8   : > { %1868 = vmatprep.subr.bf16.mxu1 (!%p189_p2), %v1750_v3  ;;  %1751 = vmatprep.subr.bf16.mxu0 (!%p189_p2), %v1750_v3  ;;  %v237_v13 = vld [vmem:[%s2479_s1 + $0x18] sm:$0xff] (!%p189_p2)  ;;  %v246_v14 = vld [vmem:[%s2479_s1 + $0x60] sm:$0xff] (!%p189_p2)  ;;  %v1757_v15 = vpack.c.bf16 (!%p189_p2), %v261_v12, %v252_v11  ;;  %v236_v16 = vld [vmem:[%s2479_s1 + $0x10] sm:$0xff] (!%p189_p2)  ;;  %vm1025_vm6 = vcmask (!%p189_p2), 400384  }
   0x9   : > { %1870 = vmatpush1.bf16.msra.mxu1 (!%p189_p2), %v1752_v8  ;;  %1753 = vmatpush1.bf16.msra.mxu0 (!%p189_p2), %v1752_v8  ;;  %v245_v17 = vld [vmem:[%s2479_s1 + $0x58] sm:$0xff] (!%p189_p2)  ;;  %v1760_v18 = vpack.c.bf16 (!%p189_p2), %v246_v14, %v237_v13  ;;  %v255_v19 = vld [vmem:[%s2479_s1 + $0xa8] sm:$0xff] (!%p189_p2)  ;;  %v264_v20 = vld [vmem:[%s2479_s1 + $0xf0] sm:$0x1f] (!%p189_p2) }
   0xa   : > { %1869 = vmatprep.subr.msk.bf16.mxu1 (!%p189_p2), %vm1982_vm2, %v1754_v9  ;;  %1756 = vmatprep.subr.msk.bf16.mxu0 (!%p189_p2), %vm1982_vm2, %v1754_v9  ;;  %v239_v21 = vld [vmem:[%s2479_s1 + $0x28] sm:$0xff] (!%p189_p2)  ;;  %v248_v22 = vld [vmem:[%s2479_s1 + $0x70] sm:$0xff] (!%p189_p2)  ;;  %v238_v23 = vld [vmem:[%s2479_s1 + $0x20] sm:$0xff] (!%p189_p2)  ;;  %v1762_v28 = vpack.c.bf16 (!%p189_p2), %v245_v17, %v236_v16  ;;  %v1764_v31 = vpack.c.bf16 (!%p189_p2), %v264_v20, %v255_v19 }
   0xb   : > { %v247_v24 = vld [vmem:[%s2479_s1 + $0x68] sm:$0xff] (!%p189_p2)  ;;  %v254_v25 = vld [vmem:[%s2479_s1 + $0xa0] sm:$0xff] (!%p189_p2)  ;;  %v1770_v26 = vpack.c.bf16 (!%p189_p2), %v248_v22, %v239_v21  ;;  %v241_v33 = vld [vmem:[%s2479_s1 + $0x38] sm:$0xff] (!%p189_p2) }
   0xc   : > { %v263_v29 = vld [vmem:[%s2479_s1 + $0xe8] sm:$0x1f] (!%p189_p2)  ;;  %v1772_v32 = vpack.c.bf16 (!%p189_p2), %v247_v24, %v238_v23  ;;  %v250_v34 = vld [vmem:[%s2479_s1 + $0x80] sm:$0xff] (!%p189_p2)  ;;  %v257_v35 = vld [vmem:[%s2479_s1 + $0xb8] sm:$0xff] (!%p189_p2) }
   0xd   : > { %s2487_s7 = smov (!%p218_p3, %s1583_s7), 7  ;;  %1871 = vmatpush1.bf16.msk.msra.mxu1 %vm1982_vm2, %v1757_v15  ;;  %1759 = vmatpush1.bf16.msk.msra.mxu0 %vm1982_vm2, %v1757_v15  ;;  %v266_v36 = vld [vmem:[%s2479_s1 + $0x100] sm:$0x1f]  ;;  %v256_v37 = vld [vmem:[%s2479_s1 + $0xb0] sm:$0xff]  ;;  %v265_v38 = vld [vmem:[%s2479_s1 + $0xf8] sm:$0x1f]  ;;  %v1767_v42 = vpack.c.bf16 %v263_v29, %v254_v25  ;;  %v1780_v45 = vpack.c.bf16 %v250_v34, %v241_v33 }
   0xe   : > { %s1584_s27 = sshll.u32 %s2487_s7, 3  ;;  %1761 = vmatprep.subr.bf16.mxu1 %v1760_v18  ;;  %1771 = vmatprep.subr.bf16.mxu0 %v1770_v26  ;;  %v1774_v39 = vpack.c.bf16 %v266_v36, %v257_v35  ;;  %v242_v40 = vld [vmem:[%s2479_s1 + $0x40] sm:$0xff]  ;;  %v251_v44 = vld [vmem:[%s2479_s1 + $0x88] sm:$0xff]  ;;  %v240_v46 = vld [vmem:[%s2479_s1 + $0x30] sm:$0xff]  ;;  %v1777_v48 = vpack.c.bf16 %v265_v38, %v256_v37 }
   0xf   : > { %s221_s12 = scalar_lea.vmem %s2478_s0, %s1584_s27  ;;  %v249_v47 = vld [vmem:[%s2479_s1 + $0x78] sm:$0xff]  ;;  %v259_v49 = vld [vmem:[%s2479_s1 + $0xc8] sm:$0xff]  ;;  %v268_v50 = vld [vmem:[%s2479_s1 + $0x110] sm:$0x1f]  ;;  %v1790_v51 = vpack.c.bf16 %v251_v44, %v242_v40 }
  0x10   : > { %v2037_v27 = vld [vmem:[%s221_s12 + $0x10] sm:$0xff]  ;;  %v2044_v30 = vld [vmem:[%s221_s12] sm:$0xff]  ;;  %v2072_v41 = vld [vmem:[%s221_s12 + $0x18] sm:$0xff]  ;;  %v1782_v52 = vpack.c.bf16 %v249_v47, %v240_v46  ;;  %v1784_v55 = vpack.c.bf16 %v268_v50, %v259_v49 }
  0x11   : > { %1592 = vmatmul.mubr.msk.f32.vlgmr.msra.gmra.mrb[0].mxu1 %vm270_vm3, %v2037_v27  ;;  %1590 = vmatmul.mubr.msk.f32.vlgmr.msra.gmra.mrb[0].mxu0 %vm270_vm3, %v2044_v30  ;;  %v2074_v43 = vld [vmem:[%s221_s12 + $0x8] sm:$0xff]  ;;  %v260_v53 = vld [vmem:[%s2479_s1 + $0xd0] sm:$0xff]  ;;  %v269_v54 = vld [vmem:[%s2479_s1 + $0x118] sm:$0x1f]  ;;  %s1652_s12 = sshll.u32 %s2487_s7, 4 }
  0x12   : > { %1763 = vmatpush1.bf16.msra.mxu1 %v1762_v28  ;;  %393 = vmatprep.mubr.f32.mxu1 %v1922_v7  ;;  %v258_v56 = vld [vmem:[%s2479_s1 + $0xc0] sm:$0xff]  ;;  %v267_v57 = vld [vmem:[%s2479_s1 + $0x108] sm:$0x1f]  ;;  %v1794_v60 = vpack.c.bf16 %v269_v54, %v260_v53  ;;  %v754_v2 = vld [vmem:[%s2480_s2 + $0x10] sm:$0xff]  ;;  %s2337_s17 = scalar_lea.vmem %s2483_s5, %s1652_s12 }
  0x13   : > { %1766 = vmatprep.subr.msk.bf16.mxu1 %vm1982_vm2, %v1764_v31  ;;  %1773 = vmatpush1.bf16.msra.mxu0 %v1772_v32  ;;  %v752_v58 = vld [vmem:[%s2480_s2] sm:$0xff]  ;;  %v753_v59 = vld [vmem:[%s2480_s2 + $0x8] sm:$0xff]  ;;  %v1787_v61 = vpack.c.bf16 %v267_v57, %v258_v56  ;;  %v755_v3 = vld [vmem:[%s2480_s2 + $0x18] sm:$0x1f] }
  0x14   : > { %381 = vmatprep.mubr.f32.mxu0 %v1922_v7  ;;  %1776 = vmatprep.subr.msk.bf16.mxu0 %vm1982_vm2, %v1774_v39  ;;  %v844_v62 = vld [vmem:[%s2481_s3] sm:$0xff]  ;;  %v845_v63 = vld [vmem:[%s2481_s3 + $0x8] sm:$0xff]  ;;  %v1800_v0 = vpack.c.bf16 %v753_v59, %v752_v58  ;;  %v846_v4 = vld [vmem:[%s2481_s3 + $0x10] sm:$0xff]  ;;  %v1804_v6 = vpack.c.bf16 %v755_v3, %v754_v2 }
  0x15   : > { %1593 = vmatmul.mubr.msk.f32.gmra.mrb[2].mxu1 %vm270_vm3, %v2072_v41  ;;  %1591 = vmatmul.mubr.msk.f32.gmra.mrb[2].mxu0 %vm270_vm3, %v2074_v43  ;;  %v1810_v1 = vpack.c.bf16 %v845_v63, %v844_v62  ;;  %v847_v5 = vld [vmem:[%s2481_s3 + $0x18] sm:$0x1f]  ;;  %v977_v9 = vld [vmem:[%s2482_s4 + $0x8] sm:$0xff]  ;;  %v984_v10 = vld [vmem:[%s2482_s4 + $0x40] sm:$0xff] }
  0x16   : > { %1769 = vmatpush1.bf16.msk.msra.mxu1 %vm1982_vm2, %v1767_v42  ;;  %464 = vmatprep.mubr.f32.mxu1 %v1922_v7  ;;  %v1814_v8 = vpack.c.bf16 %v847_v5, %v846_v4  ;;  %v979_v11 = vld [vmem:[%s2482_s4 + $0x18] sm:$0xff]  ;;  %v1820_v12 = vpack.c.bf16 %v984_v10, %v977_v9  ;;  %v986_v13 = vld [vmem:[%s2482_s4 + $0x50] sm:$0xff]  ;;  %v976_v14 = vld [vmem:[%s2482_s4] sm:$0xff] }
  0x17   : > { %1781 = vmatprep.subr.bf16.mxu1 %v1780_v45  ;;  %1779 = vmatpush1.bf16.msk.msra.mxu0 %vm1982_vm2, %v1777_v48  ;;  %v983_v15 = vld [vmem:[%s2482_s4 + $0x38] sm:$0xff]  ;;  %v1832_v16 = vpack.c.bf16 %v986_v13, %v979_v11  ;;  %v978_v18 = vld [vmem:[%s2482_s4 + $0x10] sm:$0xff]  ;;  %v985_v19 = vld [vmem:[%s2482_s4 + $0x48] sm:$0xff] }
  0x18   : > { %553 = vmatprep.mubr.f32.mxu0 %v1922_v7  ;;  %1791 = vmatprep.subr.bf16.mxu0 %v1790_v51  ;;  %v1822_v17 = vpack.c.bf16 %v983_v15, %v976_v14  ;;  %v1834_v20 = vpack.c.bf16 %v985_v19, %v978_v18  ;;  %v991_v21 = vld [vmem:[%s2482_s4 + $0x78] sm:$0xff]  ;;  %v998_v22 = vld [vmem:[%s2482_s4 + $0xb0] sm:$0xff]  ;;  %v993_v23 = vld [vmem:[%s2482_s4 + $0x88] sm:$0xff] }
  0x19   : > { %1596 = vmatmul.mubr.msk.f32.vlgmr.msra.gmra.mrb[4].mxu1 %vm270_vm3, %v2044_v30  ;;  %v1824_v24 = vpack.c.bf16 %v998_v22, %v991_v21  ;;  %v1000_v25 = vld [vmem:[%s2482_s4 + $0xc0] sm:$0xff]  ;;  %v990_v26 = vld [vmem:[%s2482_s4 + $0x70] sm:$0xff]  ;;  %v999_v31 = vld [vmem:[%s2482_s4 + $0xb8] sm:$0xff] }
  0x1a   : > { %1783 = vmatpush1.bf16.msra.mxu1 %v1782_v52  ;;  %470 = vmatprep.mubr.f32.mxu1 %v1922_v7  ;;  %v1836_v28 = vpack.c.bf16 %v1000_v25, %v993_v23  ;;  %v1005_v32 = vld [vmem:[%s2482_s4 + $0xe8] sm:$0xff]  ;;  %v1012_v34 = vld [vmem:[%s2482_s4 + $0x120] sm:$0xff]  ;;  %v1007_v35 = vld [vmem:[%s2482_s4 + $0xf8] sm:$0xff] }
  0x1b   : > { %1602 = vmatmul.mubr.msk.f32.vlgmr.msra.gmra.mrb[4].mxu0 %vm270_vm3, %v2044_v30  ;;  %1786 = vmatprep.subr.msk.bf16.mxu1 %vm1982_vm2, %v1784_v55  ;;  %v1014_v36 = vld [vmem:[%s2482_s4 + $0x130] sm:$0xff]  ;;  %v1828_v37 = vpack.c.bf16 %v1012_v34, %v1005_v32  ;;  %v1004_v39 = vld [vmem:[%s2482_s4 + $0xe0] sm:$0xff]  ;;  %v1011_v40 = vld [vmem:[%s2482_s4 + $0x118] sm:$0xff] }
  0x1c   : > { %1793 = vmatpush3.bf16.msra.mxu0 %v1790_v51  ;;  %559 = vmatprep.mubr.f32.mxu0 %v1922_v7  ;;  %v1840_v38 = vpack.c.bf16 %v1014_v36, %v1007_v35  ;;  %v1830_v42 = vpack.c.bf16 %v1011_v40, %v1004_v39  ;;  %v1019_v45 = vld [vmem:[%s2482_s4 + $0x158] sm:$0x1]  ;;  %v1021_v46 = vld [vmem:[%s2482_s4 + $0x168] sm:$0x1]  ;;  %v1018_v47 = vld [vmem:[%s2482_s4 + $0x150] sm:$0x1] }
  0x1d   : > { %1597 = vmatmul.mubr.msk.f32.gmra.mrb[6].mxu1 %vm270_vm3, %v2074_v43  ;;  %1796 = vmatprep.subr.msk.bf16.mxu0 %vm1982_vm2, %v1794_v60  ;;  %v1020_v48 = vld [vmem:[%s2482_s4 + $0x160] sm:$0x1]  ;;  %v981_v49 = vld [vmem:[%s2482_s4 + $0x28] sm:$0xff]  ;;  %v982_v52 = vld [vmem:[%s2482_s4 + $0x30] sm:$0xff] }
  0x1e   : > { %476 = vmatprep.mubr.f32.mxu1 %v1922_v7  ;;  %1789 = vmatpush1.bf16.msk.msra.mxu1 %vm1982_vm2, %v1787_v61  ;;  %v988_v50 = vld [vmem:[%s2482_s4 + $0x60] sm:$0xff]  ;;  %v989_v53 = vld [vmem:[%s2482_s4 + $0x68] sm:$0xff]  ;;  %v987_v34 = vld [vmem:[%s2482_s4 + $0x58] sm:$0xff] }
  0x1f   : > { %1603 = vmatmul.mubr.msk.f32.gmra.mrb[6].mxu0 %vm270_vm3, %v2074_v43  ;;  %1801 = vmatprep.subr.bf16.mxu1 %v1800_v0  ;;  %v1844_v51 = vpack.c.bf16 %v988_v50, %v981_v49  ;;  %v2318_v54 = vpack.c.bf16 %v989_v53, %v982_v52  ;;  %v995_v36 = vld [vmem:[%s2482_s4 + $0x98] sm:$0xff]  ;;  %v1002_v39 = vld [vmem:[%s2482_s4 + $0xd0] sm:$0xff]  ;;  %v996_v40 = vld [vmem:[%s2482_s4 + $0xa0] sm:$0xff] }
  0x20   : > { %565 = vmatprep.mubr.f32.mxu0 %v1922_v7  ;;  %1799 = vmatpush3.bf16.msk.msra.mxu0 %vm1982_vm2, %v1794_v60  ;;  %v1848_v49 = vpack.c.bf16 %v1002_v39, %v995_v36 }
  0x21   : > { %1598 = vmatmul.mubr.msk.f32.gmra.mrb[8].mxu1 %vm270_vm3, %v2037_v27  ;;  %1811 = vmatprep.subr.bf16.mxu0 %v1810_v1 }
  0x22   : > { %482 = vmatprep.mubr.f32.mxu1 %v1922_v7 }
  0x23   : > { %1604 = vmatmul.mubr.msk.f32.gmra.mrb[8].mxu0 %vm270_vm3, %v2037_v27 }
  0x24   : > { %571 = vmatprep.mubr.f32.mxu0 %v1922_v7 }
  0x25   : > { %1599 = vmatmul.mubr.msk.f32.gmra.mrb[10].mxu1 %vm270_vm3, %v2072_v41 }
  0x26   : > { %642 = vmatprep.mubr.f32.mxu1 %v1922_v7 }
  0x27   : > { %1605 = vmatmul.mubr.msk.f32.gmra.mrb[10].mxu0 %vm270_vm3, %v2072_v41 }
  0x28   : > { %1696 = vmatprep.mubr.msk.f32.mxu0 %vm270_vm3, %v2044_v30 }
  0x29   : > { %1608 = vmatmul.mubr.msk.f32.vlgmr.msra.gmra.mrb[12].mxu1 %vm270_vm3, %v2044_v30 }
  0x2a   : > { %1803 = vmatpush3.bf16.msra.mxu1 %v1800_v0  ;;  %648 = vmatprep.mubr.f32.mxu1 %v1922_v7 }
  0x2b   : > { %1697 = vmatmul.mubr.msk.f32.vlgmr.msra.gmra.mrb[12].mxu0 %vm270_vm3, %v2074_v43  ;;  %1806 = vmatprep.subr.msk.bf16.mxu1 %vm1982_vm2, %v1804_v6 }
  0x2c   : > { %1813 = vmatpush3.bf16.msra.mxu0 %v1810_v1  ;;  %1699 = vmatprep.mubr.msk.f32.mxu0 %vm270_vm3, %v2037_v27 }
  0x2d   : > { %1609 = vmatmul.mubr.msk.f32.gmra.mrb[14].mxu1 %vm270_vm3, %v2074_v43  ;;  %1816 = vmatprep.subr.msk.bf16.mxu0 %vm1982_vm2, %v1814_v8 }
  0x2e   : > { %654 = vmatprep.mubr.f32.mxu1 %v1922_v7  ;;  %1809 = vmatpush3.bf16.msk.msra.mxu1 %vm1982_vm2, %v1804_v6 }
  0x2f   : > { %1700 = vmatmul.mubr.msk.f32.gmra.mrb[14].mxu0 %vm270_vm3, %v2072_v41  ;;  %1833 = vmatprep.subr.bf16.mxu1 %v1832_v16 }
  0x30   : > { %1819 = vmatpush3.bf16.msk.msra.mxu0 %vm1982_vm2, %v1814_v8  ;;  %1724 = vmatprep.mubr.msk.f32.mxu0 %vm270_vm3, %v2044_v30 }
  0x31   : > { %1610 = vmatmul.mubr.msk.f32.gmra.mrb[16].mxu1 %vm270_vm3, %v2037_v27  ;;  %1821 = vmatprep.subr.bf16.mxu0 %v1820_v12 }
  0x32   : > { %660 = vmatprep.mubr.f32.mxu1 %v1922_v7 }
  0x33   : > { %1725 = vmatmul.mubr.msk.f32.vlgmr.msra.gmra.mrb[16].mxu0 %vm270_vm3, %v2074_v43 }
  0x34   : > { %1727 = vmatprep.mubr.msk.f32.mxu0 %vm270_vm3, %v2037_v27  ;;  %1823 = vmatpush1.bf16.msra.mxu0 %v1822_v17 }
  0x35   : > { %1611 = vmatmul.mubr.msk.f32.gmra.mrb[18].mxu1 %vm270_vm3, %v2072_v41  ;;  %1825 = vmatprep.subr.bf16.mxu0 %v1824_v24 }
  0x36   : > { %1710 = vmatprep.mubr.msk.f32.mxu1 %vm270_vm3, %v2044_v30  ;;  %v992_v30 = vld [vmem:[%s2482_s4 + $0x80] sm:$0xff] }
  0x37   : > { %1728 = vmatmul.mubr.msk.f32.gmra.mrb[18].mxu0 %vm270_vm3, %v2072_v41  ;;  %v1838_v33 = vpack.c.bf16 %v999_v31, %v992_v30 }
  0x38   : > { %1124 = vmatprep.mubr.f32.mxu0 %v1922_v7 }
  0x39   : > { %1711 = vmatmul.mubr.msk.f32.vlgmr.msra.gmra.mrb[20].mxu1 %vm270_vm3, %v2074_v43  ;;  %v1013_v43 = vld [vmem:[%s2482_s4 + $0x128] sm:$0xff] }
  0x3a   : > { %1713 = vmatprep.mubr.msk.f32.mxu1 %vm270_vm3, %v2037_v27  ;;  %1835 = vmatpush1.bf16.msra.mxu1 %v1834_v20  ;;  %v997_v27 = vld [vmem:[%s2482_s4 + $0xa8] sm:$0xff] }
  0x3b   : > { %v1826_v29 = vpack.c.bf16 %v997_v27, %v990_v26  ;;  %1837 = vmatprep.subr.bf16.mxu1 %v1836_v28 }
  0x3d   : > { %1714 = vmatmul.mubr.msk.f32.gmra.mrb[22].mxu1 %vm270_vm3, %v2072_v41  ;;  %1827 = vmatpush1.bf16.msra.mxu0 %v1826_v29  ;;  %v1006_v41 = vld [vmem:[%s2482_s4 + $0xf0] sm:$0xff] }
  0x3e   : > { %1213 = vmatprep.mubr.f32.mxu1 %v1922_v7  ;;  %1839 = vmatpush1.bf16.msra.mxu1 %v1838_v33  ;;  %v1842_v44 = vpack.c.bf16 %v1013_v43, %v1006_v41  ;;  %v980_v33 = vld [vmem:[%s2482_s4 + $0x20] sm:$0xff]  ;;  %v1003_v41 = vld [vmem:[%s2482_s4 + $0xd8] sm:$0xff] }
  0x3f   : > { %1829 = vmatprep.subr.bf16.mxu0 %v1828_v37  ;;  %1841 = vmatprep.subr.bf16.mxu1 %v1840_v38  ;;  %v1846_v43 = vpack.c.bf16 %v987_v34, %v980_v33  ;;  %v1860_v50 = vpack.c.bf16 %v1003_v41, %v996_v40 }
  0x41   : > { %1831 = vmatpush1.bf16.msra.mxu0 %v1830_v42 }
  0x42   : > { %1843 = vmatpush1.bf16.msra.mxu1 %v1842_v44  ;;  %1627 = vmatprep.subr.msk.mxu0 %vm1038_vm4, %v1019_v45  ;;  %v994_v45 = vld [vmem:[%s2482_s4 + $0x90] sm:$0xff] }
  0x43   : > { %1633 = vmatprep.subr.msk.mxu1 %vm1038_vm4, %v1021_v46  ;;  %v1001_v46 = vld [vmem:[%s2482_s4 + $0xc8] sm:$0xff] }
  0x45   : > { %1628 = vmatpush1.msk.msra.mxu0 %vm1038_vm4, %v1018_v47 }
  0x46   : > { %1634 = vmatpush1.msk.msra.mxu1 %vm1038_vm4, %v1020_v48  ;;  %1845 = vmatprep.subr.bf16.mxu0 %v1844_v51  ;;  %v1009_v51 = vld [vmem:[%s2482_s4 + $0x108] sm:$0xff] }
  0x47   : > { %1857 = vmatprep.subr.bf16.mxu1 %v2318_v54 }
  0xe4   : > { %v2321_v55 = vpop.f32.mrb[0].mxu1 }
  0xe5   : > { %v2323_v56 = vpop.f32.mrb[1].mxu1 }
  0xe8   : > { %v2325_v57 = vpop.f32.mrb[2].mxu1 }
  0xe9   : > { %v2327_v58 = vpop.f32.mrb[3].mxu1 }
  0xfc   : > { %v2329_v59 = vpop.f32.mrb[12].mxu1 }
  0xfd   : > { %v2332_v60 = vpop.f32.mrb[13].mxu1 }
  0xfe   : > { %v1698_v61 = vpop.f32.mrb[12].mxu0 }
  0xff   : > { %v1509_v62 = vmax.f32 %v1698_v61, 0.0  ;;  %v733_v63 = vpop.f32.mrb[13].mxu0  ;;  %v1016_v61 = vld [vmem:[%s2482_s4 + $0x140] sm:$0xff] }
 0x100   : > { %v2339_v0 = vpop.f32.mrb[14].mxu1  ;;  %v1508_v1 = vmax.f32 %v733_v63, 0.0  ;;  %v1017_v63 = vld [vmem:[%s2482_s4 + $0x148] sm:$0xff] }
 0x101   : > { %v2341_v2 = vpop.f32.mrb[15].mxu1  ;;  %1514 = vst [vmem:[%s2337_s17 + $0x10] sm:$0xff] %v1509_v62  ;;  %v1010_v62 = vld [vmem:[%s2482_s4 + $0x110] sm:$0xff] }
 0x102   : > { %1512 = vst [vmem:[%s2337_s17] sm:$0xff] %v1508_v1  ;;  %v1701_v3 = vpop.f32.mrb[14].mxu0 }
 0x103   : > { %v1511_v4 = vmax.f32 %v1701_v3, 0.0  ;;  %v743_v5 = vpop.f32.mrb[15].mxu0 }
 0x104   : > { %v2345_v6 = vpop.f32.mrb[16].mxu1  ;;  %v1510_v8 = vmax.f32 %v743_v5, 0.0  ;;  %v1008_v5 = vld [vmem:[%s2482_s4 + $0x100] sm:$0xff] }
 0x105   : > { %v2347_v9 = vpop.f32.mrb[17].mxu1  ;;  %1518 = vst [vmem:[%s2337_s17 + $0x30] sm:$0xff] %v1511_v4  ;;  %v1850_v4 = vpack.c.bf16 %v1001_v46, %v994_v45 }
 0x106   : > { %1516 = vst [vmem:[%s2337_s17 + $0x20] sm:$0xff] %v1510_v8  ;;  %v1726_v10 = vpop.f32.mrb[16].mxu0  ;;  %v1015_v8 = vld [vmem:[%s2482_s4 + $0x138] sm:$0xff] }
 0x107   : > { %v917_v11 = vpop.f32.mrb[17].mxu0  ;;  %v941_v15 = vmul.f32 %v1726_v10, %v1726_v10 }
 0x108   : > { %v2351_v12 = vpop.f32.mrb[18].mxu1  ;;  %v940_v18 = vmul.f32 %v917_v11, %v917_v11  ;;  %v1852_v11 = vpack.c.bf16 %v1016_v61, %v1009_v51 }
 0x109   : > { %v2353_v13 = vpop.f32.mrb[19].mxu1 }
 0x10a   : > { %v1729_v14 = vpop.f32.mrb[18].mxu0 }
 0x10b   : > { %v927_v16 = vpop.f32.mrb[19].mxu0  ;;  %v943_v23 = vmul.f32 %v1729_v14, %v1729_v14  ;;  %v1864_v14 = vpack.c.bf16 %v1017_v63, %v1010_v62 }
 0x10c   : > { %v1712_v17 = vpop.f32.mrb[20].mxu1  ;;  %v942_v26 = vmul.f32 %v927_v16, %v927_v16 }
 0x10d   : > { %v937_v19 = vmul.f32 %v1712_v17, %v1712_v17  ;;  %v825_v20 = vpop.f32.mrb[21].mxu1  ;;  %v1854_v17 = vpack.c.bf16 %v1015_v8, %v1008_v5 }
 0x10e   : > { %v936_v21 = vmul.f32 %v825_v20, %v825_v20  ;;  %v1023_v20 = vld [vmem:[%s2482_s4 + $0x178] sm:$0x1] }
 0x10f   : > { %v945_v22 = vadd.f32 %v941_v15, %v937_v19 }
 0x110   : > { %v944_v24 = vadd.f32 %v940_v18, %v936_v21  ;;  %v1715_v25 = vpop.f32.mrb[22].mxu1  ;;  %v1024_v21 = vld [vmem:[%s2482_s4 + $0x180] sm:$0x1] }
 0x111   : > { %1906 = vrsqrt.f32 %v945_v22  ;;  %v939_v27 = vmul.f32 %v1715_v25, %v1715_v25  ;;  %v835_v28 = vpop.f32.mrb[23].mxu1  ;;  %vm957_vm8 = vcmp.eq.f32.partialorder %v945_v22, inf  ;;  %v960_v3 = vand.u32 2147483648, %v945_v22 }
 0x112   : > { %1908 = vrsqrt.f32 %v944_v24  ;;  %v938_v29 = vmul.f32 %v835_v28, %v835_v28  ;;  %vm950_vm5 = vcmp.eq.f32.partialorder %v944_v24, inf  ;;  %v953_v42 = vand.u32 2147483648, %v944_v24 }
 0x113   : > { %v2355_v30 = vadd.f32 %v943_v23, %v939_v27  ;;  %vm952_vm7 = vcmp.eq.f32.partialorder %v944_v24, 0.0  ;;  %vm959_vm9 = vcmp.eq.f32.partialorder %v945_v22, 0.0  ;;  %v1022_v23 = vld [vmem:[%s2482_s4 + $0x170] sm:$0x1] }
 0x114   : > { %v2357_v31 = vadd.f32 %v942_v26, %v938_v29 }
 0x115   : > { %vm971_vm12 = vcmp.eq.f32.partialorder %v2355_v30, inf  ;;  %vm973_vm13 = vcmp.eq.f32.partialorder %v2355_v30, 0.0 }
 0x116   : > { %1910 = vrsqrt.f32 %v2357_v31  ;;  %vm964_vm10 = vcmp.eq.f32.partialorder %v2357_v31, inf  ;;  %v967_v16 = vand.u32 2147483648, %v2357_v31  ;;  %vm966_vm11 = vcmp.eq.f32.partialorder %v2357_v31, 0.0 }
 0x117   : > { %1912 = vrsqrt.f32 %v2355_v30 }
 0x11b   : > { %v1907_v32 = vpop.eup %1906 }
 0x11c   : > { %v1909_v35 = vpop.eup %1908  ;;  %v956_v38 = vmul.f32 %v1907_v32, %v945_v22 }
 0x11d   : > { %v949_v37 = vmul.f32 %v1909_v35, %v944_v24 }
 0x11e   : > { %v958_v52 = vsel %vm957_vm8, %v945_v22, %v956_v38  ;;  %v974_v22 = vand.u32 2147483648, %v2355_v30 }
 0x11f   : > { %v951_v44 = vsel %vm950_vm5, %v944_v24, %v949_v37  ;;  %v961_v10 = vsel %vm959_vm9, %v960_v3, %v958_v52 }
 0x120   : > { %v1911_v47 = vpop.eup %1910  ;;  %v2385_v48 = vsel %vm952_vm7, %v953_v42, %v951_v44 }
 0x121   : > { %1629 = vmatmul.mubr.msk.f32.vlgmr.msra.gmra.mrb[0].mxu0 %vm1025_vm6, %v2385_v48  ;;  %1635 = vmatmul.mubr.msk.f32.vlgmr.msra.gmra.mrb[4].mxu1 %vm1025_vm6, %v2385_v48  ;;  %v963_v53 = vmul.f32 %v1911_v47, %v2357_v31  ;;  %v1913_v1 = vpop.eup %1912 }
 0x122   : > { %1847 = vmatpush1.bf16.msra.mxu0 %v1846_v43  ;;  %1130 = vmatprep.mubr.f32.mxu0 %v1922_v7  ;;  %v970_v15 = vmul.f32 %v1913_v1, %v2355_v30 }
 0x123   : > { %1219 = vmatprep.mubr.f32.mxu1 %v1922_v7  ;;  %1859 = vmatpush3.bf16.msra.mxu1 %v2318_v54  ;;  %v965_v54 = vsel %vm964_vm10, %v2357_v31, %v963_v53 }
 0x124   : > { %1849 = vmatprep.subr.bf16.mxu0 %v1848_v49  ;;  %1861 = vmatprep.subr.bf16.mxu1 %v1860_v50  ;;  %v968_v18 = vsel %vm966_vm11, %v967_v16, %v965_v54  ;;  %v972_v19 = vsel %vm971_vm12, %v2355_v30, %v970_v15 }
 0x125   : > { %1630 = vmatmul.mubr.msk.f32.gmra.mrb[2].mxu0 %vm1025_vm6, %v961_v10  ;;  %1636 = vmatmul.mubr.msk.f32.gmra.mrb[6].mxu1 %vm1025_vm6, %v961_v10  ;;  %v975_v24 = vsel %vm973_vm13, %v974_v22, %v972_v19 }
 0x126   : > { %1851 = vmatpush1.bf16.msra.mxu0 %v1850_v4  ;;  %1136 = vmatprep.mubr.f32.mxu0 %v1922_v7 }
 0x127   : > { %1225 = vmatprep.mubr.f32.mxu1 %v1922_v7  ;;  %1863 = vmatpush3.bf16.msra.mxu1 %v1860_v50 }
 0x128   : > { %1853 = vmatprep.subr.bf16.mxu0 %v1852_v11  ;;  %1865 = vmatprep.subr.bf16.mxu1 %v1864_v14 }
 0x129   : > { %1631 = vmatmul.mubr.msk.f32.gmra.mrb[20].mxu0 %vm1025_vm6, %v968_v18  ;;  %1637 = vmatmul.mubr.msk.f32.gmra.mrb[8].mxu1 %vm1025_vm6, %v968_v18 }
 0x12a   : > { %1855 = vmatpush1.bf16.msra.mxu0 %v1854_v17  ;;  %1142 = vmatprep.mubr.f32.mxu0 %v1922_v7 }
 0x12b   : > { %1231 = vmatprep.mubr.f32.mxu1 %v1922_v7  ;;  %1867 = vmatpush3.bf16.msra.mxu1 %v1864_v14 }
 0x12c   : > { %1639 = vmatprep.subr.msk.mxu0 %vm1038_vm4, %v1023_v20  ;;  %1742 = vmatprep.subr.msk.mxu1 %vm1038_vm4, %v1024_v21 }
 0x12d   : > { %1632 = vmatmul.mubr.msk.f32.gmra.mrb[22].mxu0 %vm1025_vm6, %v975_v24  ;;  %1638 = vmatmul.mubr.msk.f32.gmra.mrb[10].mxu1 %vm1025_vm6, %v975_v24 }
 0x12e   : > { %1640 = vmatpush1.msk.msra.mxu0 %vm1038_vm4, %v1022_v23  ;;  %1744 = vmatprep.mubr.msk.f32.mxu1 %vm1025_vm6, %v2385_v48 }
 0x12f   : > { %1302 = vmatprep.mubr.f32.mxu0 %v1922_v7  ;;  %1743 = vmatpush3.msk.msra.mxu1 %vm1038_vm4, %v1024_v21 }
 0x131   : > { %1641 = vmatmul.mubr.msk.f32.vlgmr.msra.gmra.mrb[4].mxu0 %vm1025_vm6, %v2385_v48  ;;  %1745 = vmatmul.mubr.msk.f32.vlgmr.msra.gmra.mrb[24].mxu1 %vm1025_vm6, %v961_v10 }
 0x132   : > { %1747 = vmatprep.mubr.msk.f32.mxu1 %vm1025_vm6, %v968_v18  ;;  %1308 = vmatprep.mubr.f32.mxu0 %v1922_v7 }
 0x135   : > { %1642 = vmatmul.mubr.msk.f32.gmra.mrb[6].mxu0 %vm1025_vm6, %v961_v10  ;;  %1748 = vmatmul.mubr.msk.f32.gmra.mrb[26].mxu1 %vm1025_vm6, %v975_v24 }
 0x136   : > { %1314 = vmatprep.mubr.f32.mxu0 %v1922_v7 }
 0x139   : > { %1643 = vmatmul.mubr.msk.f32.gmra.mrb[8].mxu0 %vm1025_vm6, %v968_v18 }
 0x13a   : > { %1320 = vmatprep.mubr.f32.mxu0 %v1922_v7 }
 0x13d   : > { %1644 = vmatmul.mubr.msk.f32.gmra.mrb[10].mxu0 %vm1025_vm6, %v975_v24 }
 0x1f4   : > { %v1126_v25 = vpop.f32.mrb[0].mxu0  ;;  %v1215_v26 = vpop.f32.mrb[4].mxu1 }
 0x1f5   : > { %v1416_v27 = vmax.f32 %v1126_v25, 0.0  ;;  %v1128_v28 = vpop.f32.mrb[1].mxu0  ;;  %v1217_v29 = vpop.f32.mrb[5].mxu1  ;;  %v1440_v31 = vmax.f32 %v1215_v26, 0.0 }
 0x1f6   : > { %v1428_v30 = vmax.f32 %v1128_v28, 0.0  ;;  %v1452_v39 = vmax.f32 %v1217_v29, 0.0 }
 0x1f8   : > { %v1432_v32 = vadd.f32 %v1428_v30, %v1416_v27  ;;  %v1132_v33 = vpop.f32.mrb[2].mxu0  ;;  %v1221_v34 = vpop.f32.mrb[6].mxu1 }
 0x1f9   : > { %v1417_v35 = vmax.f32 %v1132_v33, 0.0  ;;  %v1134_v36 = vpop.f32.mrb[3].mxu0  ;;  %v1223_v37 = vpop.f32.mrb[7].mxu1  ;;  %v1441_v7 = vmax.f32 %v1221_v34, 0.0 }
 0x1fa   : > { %v1444_v38 = vadd.f32 %v1440_v31, %v1432_v32  ;;  %v1429_v40 = vmax.f32 %v1134_v36, 0.0  ;;  %v1453_v49 = vmax.f32 %v1223_v37, 0.0 }
 0x1fc   : > { %v1456_v41 = vadd.f32 %v1452_v39, %v1444_v38  ;;  %v1433_v42 = vadd.f32 %v1429_v40, %v1417_v35  ;;  %v1138_v43 = vpop.f32.mrb[20].mxu0  ;;  %v1227_v44 = vpop.f32.mrb[8].mxu1  ;;  %v1496_v35 = vmax.f32 %v2332_v60, 0.0 }
 0x1fd   : > { %v1414_v45 = vadd.f32 %v1138_v43, %v2321_v55  ;;  %v1140_v46 = vpop.f32.mrb[21].mxu0  ;;  %v1229_v47 = vpop.f32.mrb[9].mxu1  ;;  %v1442_v4 = vmax.f32 %v1227_v44, 0.0 }
 0x1fe   : > { %v1445_v48 = vadd.f32 %v1441_v7, %v1433_v42  ;;  %v1426_v50 = vadd.f32 %v1140_v46, %v2323_v56  ;;  %v1454_v11 = vmax.f32 %v1229_v47, 0.0 }
 0x1ff   : > { %v1418_v51 = vmax.f32 %v1414_v45, 0.0 }
 0x200   : > { %v1457_v52 = vadd.f32 %v1453_v49, %v1445_v48  ;;  %v1430_v53 = vmax.f32 %v1426_v50, 0.0  ;;  %v1144_v61 = vpop.f32.mrb[22].mxu0  ;;  %v1233_v62 = vpop.f32.mrb[10].mxu1 }
 0x201   : > { %v1415_v63 = vadd.f32 %v1144_v61, %v2325_v57  ;;  %v1146_v1 = vpop.f32.mrb[23].mxu0  ;;  %v1235_v3 = vpop.f32.mrb[11].mxu1  ;;  %v1443_v56 = vmax.f32 %v1233_v62, 0.0 }
 0x202   : > { %v1434_v5 = vadd.f32 %v1430_v53, %v1418_v51  ;;  %v1427_v8 = vadd.f32 %v1146_v1, %v2327_v58  ;;  %v1455_v58 = vmax.f32 %v1235_v3, 0.0  ;;  %v1498_v51 = vmax.f32 %v2347_v9, 0.0 }
 0x203   : > { %v1419_v55 = vmax.f32 %v1415_v63, 0.0  ;;  %v1499_v1 = vmax.f32 %v2353_v13, 0.0 }
 0x204   : > { %v1446_v10 = vadd.f32 %v1442_v4, %v1434_v5  ;;  %v1431_v14 = vmax.f32 %v1427_v8, 0.0  ;;  %v1304_v54 = vpop.f32.mrb[4].mxu0  ;;  %v1746_v15 = vpop.f32.mrb[24].mxu1 }
 0x205   : > { %v1464_v16 = vmax.f32 %v1304_v54, 0.0  ;;  %v1485_v17 = vadd.f32 %v1746_v15, %v2339_v0  ;;  %v1306_v18 = vpop.f32.mrb[5].mxu0  ;;  %v1393_v19 = vpop.f32.mrb[25].mxu1 }
 0x206   : > { %v1458_v20 = vadd.f32 %v1454_v11, %v1446_v10  ;;  %v1435_v57 = vadd.f32 %v1431_v14, %v1419_v55  ;;  %v1476_v21 = vmax.f32 %v1306_v18, 0.0  ;;  %v1484_v22 = vadd.f32 %v1393_v19, %v2329_v59 }
 0x207   : > { %v1468_v23 = vadd.f32 %v1464_v16, %v1456_v41  ;;  %v1489_v38 = vmax.f32 %v1485_v17, 0.0 }
 0x208   : > { %v1447_v24 = vadd.f32 %v1443_v56, %v1435_v57  ;;  %v1488_v25 = vmax.f32 %v1484_v22, 0.0  ;;  %v1310_v26 = vpop.f32.mrb[6].mxu0  ;;  %v1749_v27 = vpop.f32.mrb[26].mxu1 }
 0x209   : > { %v1480_v28 = vadd.f32 %v1476_v21, %v1468_v23  ;;  %v1465_v29 = vmax.f32 %v1310_v26, 0.0  ;;  %v1487_v30 = vadd.f32 %v1749_v27, %v2351_v12  ;;  %v1312_v31 = vpop.f32.mrb[7].mxu0  ;;  %v1403_v32 = vpop.f32.mrb[27].mxu1  ;;  %v1497_v12 = vmax.f32 %v2341_v2, 0.0 }
 0x20a   : > { %v1459_v0 = vadd.f32 %v1455_v58, %v1447_v24  ;;  %v1477_v33 = vmax.f32 %v1312_v31, 0.0  ;;  %v1486_v34 = vadd.f32 %v1403_v32, %v2345_v6 }
 0x20b   : > { %v1492_v59 = vadd.f32 %v1488_v25, %v1480_v28  ;;  %v1469_v36 = vadd.f32 %v1465_v29, %v1457_v52  ;;  %v1491_v2 = vmax.f32 %v1487_v30, 0.0 }
 0x20c   : > { %v1316_v37 = vpop.f32.mrb[8].mxu0  ;;  %v1490_v47 = vmax.f32 %v1486_v34, 0.0 }
 0x20d   : > { %v1500_v39 = vsub.f32 %v1492_v59, %v1496_v35  ;;  %v1481_v40 = vadd.f32 %v1477_v33, %v1469_v36  ;;  %v1466_v41 = vmax.f32 %v1316_v37, 0.0  ;;  %v1318_v7 = vpop.f32.mrb[9].mxu0 }
 0x20e   : > { %v1478_v42 = vmax.f32 %v1318_v7, 0.0 }
 0x20f   : > { %v1504_v43 = vmul.f32 0.16666667, %v1500_v39  ;;  %v1493_v44 = vadd.f32 %v1489_v38, %v1481_v40  ;;  %v1470_v45 = vadd.f32 %v1466_v41, %v1458_v20 }
 0x210   : > { %v1322_v46 = vpop.f32.mrb[10].mxu0 }
 0x211   : > { %1513 = vst [vmem:[%s2337_s17 + $0x8] sm:$0xff] %v1504_v43  ;;  %v1501_v6 = vsub.f32 %v1493_v44, %v1497_v12  ;;  %v1482_v60 = vadd.f32 %v1478_v42, %v1470_v45  ;;  %v1467_v48 = vmax.f32 %v1322_v46, 0.0  ;;  %v1324_v49 = vpop.f32.mrb[11].mxu0 }
 0x212   : > { %v1479_v50 = vmax.f32 %v1324_v49, 0.0 }
 0x213   : > { %v1505_v52 = vmul.f32 0.16666667, %v1501_v6  ;;  %v1494_v53 = vadd.f32 %v1490_v47, %v1482_v60  ;;  %v1471_v61 = vadd.f32 %v1467_v48, %v1459_v0 }
 0x215   : > { %1515 = vst [vmem:[%s2337_s17 + $0x18] sm:$0xff] %v1505_v52  ;;  %v1502_v62 = vsub.f32 %v1494_v53, %v1498_v51  ;;  %v1483_v63 = vadd.f32 %v1479_v50, %v1471_v61 }
 0x217   : > { %v1506_v3 = vmul.f32 0.16666667, %v1502_v62  ;;  %v1495_v4 = vadd.f32 %v1491_v2, %v1483_v63 }
 0x219   : > { %1517 = vst [vmem:[%s2337_s17 + $0x28] sm:$0xff] %v1506_v3  ;;  %v1503_v5 = vsub.f32 %v1495_v4, %v1499_v1 }
 0x21b   : > { %v1507_v8 = vmul.f32 0.16666667, %v1503_v5 }
 0x21d   : > { %1519 = vst [vmem:[%s2337_s17 + $0x38] sm:$0xff] %v1507_v8 }
 0x21e PF: > { %s15_s18 = sadd.s32 1, %s1920_s18  }
 0x21f   : > { %p12_p4 = scmp.ge.s32.totalorder %s15_s18, 4  }
 0x221   :  { %14 = sbr.rel (!%p12_p4) target bundleno = 1 (0x1), region = 70 }

</bundles_post_ra>
